<compile_context>
chip_gen: v7x
topology: tpu7x:2x2x1
jax: 0.10.0
libtpu: 0.0.40
codegen_flags: <defaults>
</compile_context>

<pallas_src>
import jax
import jax.numpy as jnp
from jax.experimental import pallas as pl
from jax.experimental.pallas import tpu as pltpu


# ----------------------------------------------------------------------------
# Kernels
# ----------------------------------------------------------------------------
def _ffn_kernel_acc_in_out(x_ref, w1_ref, b1_ref, w2_ref, b2_ref, o_ref):
    """f32 output: accumulate directly into the VMEM-resident output block."""
    # x_ref:  (tm, d_model)   w1_ref: (d_model, tf)   b1_ref: (1, tf)
    # w2_ref: (tf, d_model)   b2_ref: (1, d_model)    o_ref:  (tm, d_model) f32
    j = pl.program_id(1)

    @pl.when(j == 0)
    def _init():
        # Initialize with the second bias -> no separate finalize add needed.
        o_ref[...] = jnp.broadcast_to(b2_ref[...], o_ref.shape).astype(o_ref.dtype)

    h = jnp.dot(x_ref[...], w1_ref[...], preferred_element_type=jnp.float32)
    h = jnp.maximum(h + b1_ref[...].astype(jnp.float32), 0.0)
    o_ref[...] += jnp.dot(
        h.astype(w2_ref.dtype), w2_ref[...], preferred_element_type=jnp.float32
    )


def _ffn_kernel_scratch(x_ref, w1_ref, b1_ref, w2_ref, b2_ref, o_ref, acc_ref):
    """Narrow (e.g. bf16) output: accumulate in an f32 VMEM scratch."""
    j = pl.program_id(1)

    @pl.when(j == 0)
    def _init():
        acc_ref[...] = jnp.zeros_like(acc_ref)

    h = jnp.dot(x_ref[...], w1_ref[...], preferred_element_type=jnp.float32)
    h = jnp.maximum(h + b1_ref[...].astype(jnp.float32), 0.0)
    acc_ref[...] += jnp.dot(
        h.astype(w2_ref.dtype), w2_ref[...], preferred_element_type=jnp.float32
    )

    @pl.when(j == pl.num_programs(1) - 1)
    def _finalize():
        o_ref[...] = (acc_ref[...] + b2_ref[...].astype(jnp.float32)).astype(o_ref.dtype)


# ----------------------------------------------------------------------------
# Tiling helpers
# ----------------------------------------------------------------------------
def _round_up(x, m):
    return ((x + m - 1) // m) * m


def _generation_config():
    """(target_tm, target_tf, physical_vmem_bytes) per TPU generation."""
    kind = ""
    try:
        kind = jax.devices()[0].device_kind.lower()
    except Exception:
        pass
    if "v7" in kind:
        return 512, 256, 64 << 20      # v7x: 64 MiB VMEM/TC, 3.2 TB/s HBM
    if "v6" in kind:
        return 1024, 256, 128 << 20    # v6e: needs large tm to stay MXU-bound
    if "v5" in kind and ("lite" in kind or "v5e" in kind):
        return 256, 256, 128 << 20     # v5e: 0.82 TB/s HBM, 197 TF/s
    if "v5" in kind or "v4" in kind:
        return 512, 256, 128 << 20
    # Unknown / interpret: conservative defaults (fit 64 MiB VMEM).
    return 512, 256, 64 << 20


def _pick_tm(M, target):
    """Row tile: pick # of tiles first, then size -> minimal M padding."""
    target = max(8, _round_up(target, 8))
    if M <= target:
        return _round_up(M, 8)
    n_tiles = -(-M // target)
    return _round_up(-(-M // n_tiles), 8)


def _choose_tf(d_ff, target):
    """d_ff tile that divides d_ff (no weight padding). Returns (tf, Fp)."""
    if d_ff <= max(target, 1):
        return d_ff, d_ff
    t = max(128, (target // 128) * 128)
    for cand in range(t, 127, -128):
        if d_ff % cand == 0:
            return cand, d_ff
    # Rare fallback (d_ff not a multiple of 128): pad.
    return t, _round_up(d_ff, t)


def _vmem_footprint(tm, tf, dmp, in_isz, w_isz, out_isz, use_acc):
    fp = 2 * tm * dmp * in_isz          # x tile, double-buffered
    fp += 2 * dmp * tf * w_isz          # W1 tile
    fp += 2 * tf * w_isz                # b1 tile
    fp += 2 * tf * dmp * w_isz          # W2 tile
    fp += 2 * dmp * w_isz               # b2
    fp += 2 * tm * dmp * out_isz        # output tile
    if use_acc:
        fp += tm * dmp * 4              # f32 accumulator (single-buffered)
    return fp


# ----------------------------------------------------------------------------
# Wrapper
# ----------------------------------------------------------------------------
def positionwise_feed_forward(x, w1, b1, w2, b2, *, tm=None, tf=None):
    """x: [B, S, d_model]; w1: [d_model, d_ff]; b1: [d_ff];
    w2: [d_ff, d_model]; b2: [d_model]. Returns [B, S, d_model]."""
    B, S, d_model = x.shape
    d_ff = w1.shape[1]
    M = B * S

    in_isz = jnp.dtype(x.dtype).itemsize
    w_isz = jnp.dtype(w1.dtype).itemsize
    out_dtype = x.dtype
    out_isz = jnp.dtype(out_dtype).itemsize
    use_acc_scratch = jnp.dtype(out_dtype) != jnp.dtype(jnp.float32)

    # Lane-dense last dim: pad d_model to a multiple of 128 (no-op for real
    # transformer widths).
    dmp = _round_up(d_model, 128)

    tm_target, tf_target, vmem_cap = _generation_config()
    if tm is not None:
        tm_target = max(8, int(tm))
    if tf is not None:
        tf_target = int(tf)
    budget = int(vmem_cap * 0.75)

    tf_sel, Fp = _choose_tf(d_ff, tf_target)
    tm_sel = _pick_tm(M, tm_target)

    # Shrink tiles until the double-buffered footprint fits the VMEM budget.
    while _vmem_footprint(tm_sel, tf_sel, dmp, in_isz, w_isz, out_isz,
                          use_acc_scratch) > budget:
        new_tf, new_Fp = _choose_tf(d_ff, tf_sel // 2)
        if 128 <= new_tf < tf_sel:
            tf_sel, Fp = new_tf, new_Fp
            continue
        if tm_sel > 64:
            tm_sel = _pick_tm(M, max(64, tm_sel // 2))
            continue
        break

    Mp = _round_up(M, tm_sel)

    # --- Pad operands (zero padding keeps the math exact; padded columns of
    # W2 / rows of W1 contribute nothing, padded output columns are sliced off).
    x2d = x.reshape(M, d_model)
    if Mp != M or dmp != d_model:
        x2d = jnp.pad(x2d, ((0, Mp - M), (0, dmp - d_model)))
    w1p, b1p, w2p, b2p = w1, b1, w2, b2
    if dmp != d_model:
        w1p = jnp.pad(w1p, ((0, dmp - d_model), (0, 0)))
        w2p = jnp.pad(w2p, ((0, 0), (0, dmp - d_model)))
        b2p = jnp.pad(b2p, ((0, dmp - d_model),))
    if Fp != d_ff:
        # TODO(synk): only hit when d_ff has no multiple-of-128 divisor;
        # pre-pad weights once outside the hot path in that case.
        w1p = jnp.pad(w1p, ((0, 0), (0, Fp - d_ff)))
        b1p = jnp.pad(b1p, ((0, Fp - d_ff),))
        w2p = jnp.pad(w2p, ((0, Fp - d_ff), (0, 0)))

    b1_2d = b1p.reshape(1, Fp)
    b2_2d = b2p.reshape(1, dmp)

    grid = (Mp // tm_sel, Fp // tf_sel)
    n_row_tiles = grid[0]

    # Weights are re-streamed from HBM once per M tile.
    cost = pl.CostEstimate(
        flops=4 * Mp * dmp * Fp,  # two matmuls, 2*M*K*N each
        transcendentals=0,
        bytes_accessed=(
            Mp * dmp * in_isz
            + n_row_tiles * (dmp * Fp + Fp * dmp) * w_isz
            + Mp * dmp * out_isz
        ),
    )

    footprint = _vmem_footprint(tm_sel, tf_sel, dmp, in_isz, w_isz, out_isz,
                                use_acc_scratch)
    vmem_limit = int(min(vmem_cap - (4 << 20),
                         max(footprint + (4 << 20), 32 << 20)))

    if use_acc_scratch:
        kernel = _ffn_kernel_scratch
        scratch_shapes = [pltpu.VMEM((tm_sel, dmp), jnp.float32)]
    else:
        kernel = _ffn_kernel_acc_in_out
        scratch_shapes = []

    out2d = pl.pallas_call(
        kernel,
        out_shape=jax.ShapeDtypeStruct((Mp, dmp), out_dtype),
        grid_spec=pltpu.PrefetchScalarGridSpec(
            num_scalar_prefetch=0,
            grid=grid,
            in_specs=[
                pl.BlockSpec((tm_sel, dmp), lambda i, j: (i, 0)),   # x row tile
                pl.BlockSpec((dmp, tf_sel), lambda i, j: (0, j)),   # W1 d_ff tile
                pl.BlockSpec((1, tf_sel), lambda i, j: (0, j)),     # b1 d_ff tile
                pl.BlockSpec((tf_sel, dmp), lambda i, j: (j, 0)),   # W2 d_ff tile
                pl.BlockSpec((1, dmp), lambda i, j: (0, 0)),        # b2
            ],
            out_specs=pl.BlockSpec((tm_sel, dmp), lambda i, j: (i, 0)),
            scratch_shapes=scratch_shapes,
        ),
        compiler_params=pltpu.CompilerParams(
            # M axis independent (megacore / dual-TC sharding); d_ff axis is a
            # reduction over a revisited output block -> "arbitrary", kept last.
            dimension_semantics=("parallel", "arbitrary"),
            vmem_limit_bytes=vmem_limit,
        ),
        cost_estimate=cost,
    )(x2d, w1p, b1_2d, w2p, b2_2d)

    return out2d[:M, :d_model].reshape(B, S, d_model)


# ----------------------------------------------------------------------------
# Reference + self-test
# ----------------------------------------------------------------------------
def reference_ffn(x, w1, b1, w2, b2):
    h = jnp.maximum(jnp.einsum("bsd,df->bsf", x, w1) + b1, 0.0)
    return jnp.einsum("bsf,fd->bsd", h, w2) + b2


def _make_params(key, d_model, d_ff, dtype):
    k1, k2, k3, k4 = jax.random.split(key, 4)
    bound1 = 1.0 / (d_model ** 0.5)
    bound2 = 1.0 / (d_ff ** 0.5)
    w1 = jax.random.uniform(k1, (d_model, d_ff), jnp.float32, -bound1, bound1)
    b1 = jax.random.uniform(k2, (d_ff,), jnp.float32, -bound1, bound1)
    w2 = jax.random.uniform(k3, (d_ff, d_model), jnp.float32, -bound2, bound2)
    b2 = jax.random.uniform(k4, (d_model,), jnp.float32, -bound2, bound2)
    return (w1.astype(dtype), b1.astype(dtype), w2.astype(dtype), b2.astype(dtype))


if __name__ == "__main__":
    key = jax.random.PRNGKey(0)

    # ---- Test 1: module-sized demo (batch=2, seq=8, d_model=32, d_ff=64).
    B, S, d_model, d_ff = 2, 8, 32, 64
    kx, kp = jax.random.split(key)
    x = jax.random.normal(kx, (B, S, d_model), dtype=jnp.float32)
    w1, b1, w2, b2 = _make_params(kp, d_model, d_ff, jnp.float32)
    out = jax.block_until_ready(positionwise_feed_forward(x, w1, b1, w2, b2))
    ref = reference_ffn(x, w1, b1, w2, b2)
    assert out.shape == (B, S, d_model)
    assert jnp.allclose(out, ref, atol=1e-5, rtol=1e-5), "f32 demo mismatch"

    # ---- Test 2: exercise the tiled d_ff reduction and multiple M tiles
    # (grid = (3, 4)) with the accumulate-into-output f32 kernel.
    B2, S2, dm2, df2 = 2, 24, 128, 512
    kx2, kp2 = jax.random.split(kp)
    x2 = jax.random.normal(kx2, (B2, S2, dm2), dtype=jnp.float32)
    w1b, b1b, w2b, b2b = _make_params(kp2, dm2, df2, jnp.float32)
    out2 = jax.block_until_ready(
        positionwise_feed_forward(x2, w1b, b1b, w2b, b2b, tm=16, tf=128))
    ref2 = reference_ffn(x2, w1b, b1b, w2b, b2b)
    assert jnp.allclose(out2, ref2, atol=1e-4, rtol=1e-4), "tiled f32 mismatch"

    # ---- Test 3: bf16 path (f32 scratch-accumulator kernel variant).
    xb = x2.astype(jnp.bfloat16)
    w1c, b1c, w2c, b2c = (a.astype(jnp.bfloat16) for a in (w1b, b1b, w2b, b2b))
    out3 = jax.block_until_ready(
        positionwise_feed_forward(xb, w1c, b1c, w2c, b2c, tm=16, tf=128))
    ref3 = reference_ffn(
        xb.astype(jnp.float32), w1c.astype(jnp.float32), b1c.astype(jnp.float32),
        w2c.astype(jnp.float32), b2c.astype(jnp.float32))
    assert jnp.allclose(out3.astype(jnp.float32), ref3, atol=1e-1, rtol=5e-2), \
        "bf16 mismatch"

    print("KERNEL_OK")
</pallas_src>

<mosaic_0001>
module attributes {stable_mosaic.version = 11 : i64} {
  func.func @_ffn_kernel_acc_in_out(%arg0: i32, %arg1: i32, %arg2: memref<16x128xf32, #tpu.memory_space<vmem>>, %arg3: memref<128x64xf32, #tpu.memory_space<vmem>>, %arg4: memref<1x64xf32, #tpu.memory_space<vmem>>, %arg5: memref<64x128xf32, #tpu.memory_space<vmem>>, %arg6: memref<1x128xf32, #tpu.memory_space<vmem>>, %arg7: memref<16x128xf32, #tpu.memory_space<vmem>>) attributes {dimension_semantics = [#tpu.dimension_semantics<parallel>, #tpu.dimension_semantics<arbitrary>], iteration_bounds = array<i64: 1, 1>, scalar_prefetch = 0 : i64, scratch_operands = 0 : i64, tpu.core_type = #tpu.core_type<tc>, window_params = [{transform_indices = @transform_0, window_bounds = array<i64: 16, 128>}, {transform_indices = @transform_1, window_bounds = array<i64: 128, 64>}, {transform_indices = @transform_2, window_bounds = array<i64: 1, 64>}, {transform_indices = @transform_3, window_bounds = array<i64: 64, 128>}, {pipeline_mode = #tpu.pipeline_mode<synchronous>, transform_indices = @transform_4, window_bounds = array<i64: 1, 128>}, {transform_indices = @transform_5, window_bounds = array<i64: 16, 128>}]} {
    %c0_i32 = arith.constant 0 : i32
    %0 = arith.cmpi eq, %arg1, %c0_i32 : i32
    %1 = arith.extui %0 : i1 to i32
    %c0_i32_0 = arith.constant 0 : i32
    %2 = arith.cmpi ne, %1, %c0_i32_0 : i32
    scf.if %2 {
      %c0_14 = arith.constant 0 : index
      %c0_15 = arith.constant 0 : index
      %16 = vector.load %arg6[%c0_14, %c0_15] : memref<1x128xf32, #tpu.memory_space<vmem>>, vector<1x128xf32>
      %17 = vector.shape_cast %16 : vector<1x128xf32> to vector<1x128xf32>
      %18 = vector.broadcast %17 : vector<1x128xf32> to vector<16x128xf32>
      %c0_16 = arith.constant 0 : index
      %c0_17 = arith.constant 0 : index
      %19 = vector.load %arg7[%c0_16, %c0_17] : memref<16x128xf32, #tpu.memory_space<vmem>>, vector<16x128xf32>
      tpu.vector_store %arg7[%c0_16, %c0_17], %18 {strides = array<i32>} : memref<16x128xf32, #tpu.memory_space<vmem>>, vector<16x128xf32>,
    } else {
    }
    %c0 = arith.constant 0 : index
    %c0_1 = arith.constant 0 : index
    %3 = vector.load %arg2[%c0, %c0_1] : memref<16x128xf32, #tpu.memory_space<vmem>>, vector<16x128xf32>
    %c0_2 = arith.constant 0 : index
    %c0_3 = arith.constant 0 : index
    %4 = vector.load %arg3[%c0_2, %c0_3] : memref<128x64xf32, #tpu.memory_space<vmem>>, vector<128x64xf32>
    %cst = arith.constant dense<0.000000e+00> : vector<16x64xf32>
    %5 = tpu.matmul %3, %4, %cst {dimension_numbers = #tpu.dot_dimension_numbers<[1], [0], [0], [1], [0, 0, 1, 1], [], []>} : vector<16x128xf32>, vector<128x64xf32>, vector<16x64xf32> -> vector<16x64xf32>
    %c0_4 = arith.constant 0 : index
    %c0_5 = arith.constant 0 : index
    %6 = vector.load %arg4[%c0_4, %c0_5] : memref<1x64xf32, #tpu.memory_space<vmem>>, vector<1x64xf32>
    %7 = vector.broadcast %6 : vector<1x64xf32> to vector<16x64xf32>
    %8 = arith.addf %5, %7 : vector<16x64xf32>
    %cst_6 = arith.constant 0.000000e+00 : f32
    %9 = vector.broadcast %cst_6 : f32 to vector<16x64xf32>
    %10 = arith.maximumf %8, %9 : vector<16x64xf32>
    %c0_7 = arith.constant 0 : index
    %c0_8 = arith.constant 0 : index
    %11 = vector.load %arg7[%c0_7, %c0_8] : memref<16x128xf32, #tpu.memory_space<vmem>>, vector<16x128xf32>
    %c0_9 = arith.constant 0 : index
    %c0_10 = arith.constant 0 : index
    %12 = vector.load %arg5[%c0_9, %c0_10] : memref<64x128xf32, #tpu.memory_space<vmem>>, vector<64x128xf32>
    %cst_11 = arith.constant dense<0.000000e+00> : vector<16x128xf32>
    %13 = tpu.matmul %10, %12, %cst_11 {dimension_numbers = #tpu.dot_dimension_numbers<[1], [0], [0], [1], [0, 0, 1, 1], [], []>} : vector<16x64xf32>, vector<64x128xf32>, vector<16x128xf32> -> vector<16x128xf32>
    %14 = arith.addf %11, %13 : vector<16x128xf32>
    %c0_12 = arith.constant 0 : index
    %c0_13 = arith.constant 0 : index
    %15 = vector.load %arg7[%c0_12, %c0_13] : memref<16x128xf32, #tpu.memory_space<vmem>>, vector<16x128xf32>
    tpu.vector_store %arg7[%c0_12, %c0_13], %14 {strides = array<i32>} : memref<16x128xf32, #tpu.memory_space<vmem>>, vector<16x128xf32>,
    return
  }
  func.func @transform_0(%arg0: i32, %arg1: i32) -> (i32, i32) {
    %c0_i32 = arith.constant 0 : i32
    %c0_i32_0 = arith.constant 0 : i32
    return %arg0, %c0_i32 : i32, i32
  }
  func.func @transform_1(%arg0: i32, %arg1: i32) -> (i32, i32) {
    %c0_i32 = arith.constant 0 : i32
    %c0_i32_0 = arith.constant 0 : i32
    return %c0_i32, %arg1 : i32, i32
  }
  func.func @transform_2(%arg0: i32, %arg1: i32) -> (i32, i32) {
    %c0_i32 = arith.constant 0 : i32
    %c0_i32_0 = arith.constant 0 : i32
    return %c0_i32, %arg1 : i32, i32
  }
  func.func @transform_3(%arg0: i32, %arg1: i32) -> (i32, i32) {
    %c0_i32 = arith.constant 0 : i32
    %c0_i32_0 = arith.constant 0 : i32
    return %arg1, %c0_i32 : i32, i32
  }
  func.func @transform_4(%arg0: i32, %arg1: i32) -> (i32, i32) {
    %c0_i32 = arith.constant 0 : i32
    %c0_i32_0 = arith.constant 0 : i32
    %c0_i32_1 = arith.constant 0 : i32
    return %c0_i32, %c0_i32_0 : i32, i32
  }
  func.func @transform_5(%arg0: i32, %arg1: i32) -> (i32, i32) {
    %c0_i32 = arith.constant 0 : i32
    %c0_i32_0 = arith.constant 0 : i32
    return %arg0, %c0_i32 : i32, i32
  }
}

</mosaic_0001>

<bundles_post_ra>
// kernel: tpu_custom_call.1
= control target key start
LH: loop header
LB: loop body
LE: loop exit
PB: predicated region body
PF: predicated region fallthrough
CT: control target
= control target key end

     0   :  { %s538_s0 = inlined_call_operand.vmem [shape: f32[16,128], index: 0, kind: input, shape index: {}]   ;;  %s539_s1 = inlined_call_operand.vmem [shape: f32[128,64], index: 1, kind: input, shape index: {}]   ;;  %s540_s2 = inlined_call_operand.vmem [shape: f32[1,64], index: 2, kind: input, shape index: {}]   ;;  %s541_s3 = inlined_call_operand.vmem [shape: f32[64,128], index: 3, kind: input, shape index: {}]   ;;  %s542_s4 = inlined_call_operand.vmem [shape: f32[1,128], index: 4, kind: input, shape index: {}]   ;;  %s543_s5 = inlined_call_operand.hbm [shape: f32[16,128], index: 5, kind: output, shape index: {}]  }
   0x1   :  { %v36_v0 = vld [vmem:[%s539_s1] sm:$0xff]  ;;  %v37_v1 = vld [vmem:[%s539_s1 + $0x8] sm:$0xff]  ;;  %v38_v2 = vld [vmem:[%s539_s1 + $0x10] sm:$0xff] }
   0x2   :  { %v334_v3 = vpack.c.bf16 %v37_v1, %v36_v0  ;;  %v39_v4 = vld [vmem:[%s539_s1 + $0x18] sm:$0xff]  ;;  %v40_v6 = vld [vmem:[%s539_s1 + $0x20] sm:$0xff]  ;;  %v41_v7 = vld [vmem:[%s539_s1 + $0x28] sm:$0xff] }
   0x3   :  { %v338_v5 = vpack.c.bf16 %v39_v4, %v38_v2  ;;  %v342_v8 = vpack.c.bf16 %v41_v7, %v40_v6  ;;  %v42_v9 = vld [vmem:[%s539_s1 + $0x30] sm:$0xff]  ;;  %v43_v10 = vld [vmem:[%s539_s1 + $0x38] sm:$0xff]  ;;  %v34_v11 = vld [vmem:[%s538_s0] sm:$0xff] }
   0x4   :  { %335 = vmatprep.subr.bf16.mxu0 %v334_v3  ;;  %312 = vmatprep.mubr.f32.mxu0 %v34_v11  ;;  %v138_v12 = vld [vmem:[%s541_s3] sm:$0xff]  ;;  %v139_v13 = vld [vmem:[%s541_s3 + $0x8] sm:$0xff]  ;;  %v140_v14 = vld [vmem:[%s541_s3 + $0x10] sm:$0xff] }
   0x5   :  { %337 = vmatpush3.bf16.msra.mxu0 %v334_v3  ;;  %v366_v15 = vpack.c.bf16 %v139_v13, %v138_v12  ;;  %v141_v16 = vld [vmem:[%s541_s3 + $0x18] sm:$0xff]  ;;  %v142_v18 = vld [vmem:[%s541_s3 + $0x20] sm:$0xff]  ;;  %v143_v19 = vld [vmem:[%s541_s3 + $0x28] sm:$0xff] }
   0x6   :  { %339 = vmatprep.subr.bf16.mxu0 %v338_v5  ;;  %v370_v17 = vpack.c.bf16 %v141_v16, %v140_v14 }
   0x9   :  { %341 = vmatpush3.bf16.msra.mxu0 %v338_v5 }
   0xa   :  { %10 = vsyncpa [#allocation3], 0  ;;  %343 = vmatprep.subr.bf16.mxu0 %v342_v8  ;;  %v346_v20 = vpack.c.bf16 %v43_v10, %v42_v9  ;;  %367 = vmatprep.subr.bf16.mxu1 %v366_v15  ;;  %v44_v21 = vld [vmem:[%s539_s1 + $0x40] sm:$0xff]  ;;  %v45_v22 = vld [vmem:[%s539_s1 + $0x48] sm:$0xff]  ;;  %v374_v23 = vpack.c.bf16 %v143_v19, %v142_v18  ;;  %vm146_vm0 = vcmask 523264  }
   0xb   :  { %369 = vmatpush3.bf16.msra.mxu1 %v366_v15  ;;  %v350_v24 = vpack.c.bf16 %v45_v22, %v44_v21  ;;  %v46_v25 = vld [vmem:[%s539_s1 + $0x50] sm:$0xff]  ;;  %v47_v26 = vld [vmem:[%s539_s1 + $0x58] sm:$0xff]  ;;  %v48_v28 = vld [vmem:[%s539_s1 + $0x60] sm:$0xff] }
   0xc   :  { %371 = vmatprep.subr.bf16.mxu1 %v370_v17  ;;  %v354_v27 = vpack.c.bf16 %v47_v26, %v46_v25  ;;  %v49_v29 = vld [vmem:[%s539_s1 + $0x68] sm:$0xff]  ;;  %v50_v31 = vld [vmem:[%s539_s1 + $0x70] sm:$0xff]  ;;  %v51_v32 = vld [vmem:[%s539_s1 + $0x78] sm:$0xff] }
   0xd   :  { %345 = vmatpush3.bf16.msra.mxu0 %v342_v8  ;;  %v358_v30 = vpack.c.bf16 %v49_v29, %v48_v28  ;;  %v362_v33 = vpack.c.bf16 %v51_v32, %v50_v31  ;;  %v35_v34 = vld [vmem:[%s538_s0 + $0x8] sm:$0xff]  ;;  %v144_v35 = vld [vmem:[%s541_s3 + $0x30] sm:$0xff]  ;;  %v145_v36 = vld [vmem:[%s541_s3 + $0x38] sm:$0xff]  ;;  %s409_s3 = smov [#allocation2]  }
   0xe   :  { %347 = vmatprep.subr.bf16.mxu0 %v346_v20  ;;  %v378_v37 = vpack.c.bf16 %v145_v36, %v144_v35  ;;  %v249_v38 = vld [vmem:[%s540_s2] ss:$0 sm:$0xff]  ;;  %s237_s22 = sshll.u32 %s409_s3, 4  ;;  %s238_s22 = int_to_ptr.vmem [resolvable:$true] %s237_s22 }
   0xf   :  { %373 = vmatpush3.bf16.msra.mxu1 %v370_v17  ;;  %v248_v45 = vld [vmem:[%s542_s4] ss:$0 sm:$0xff]  ;;  %s385_s2 = scalar_lea.vmem %s238_s22, 256  ;;  %p390_p1 = scmp.lt.s32.totalorder %s238_s22, %s238_s22 }
  0x10   :  { %375 = vmatprep.subr.bf16.mxu1 %v374_v23  ;;  %p386_p0 = scmp.ne.s32.totalorder %s238_s22, %s385_s2  ;;  %p391_p2 = scmp.lt.s32.totalorder %s385_s2, %s385_s2 }
  0x11   :  { %349 = vmatpush3.bf16.msra.mxu0 %v346_v20 }
  0x12   :  { %351 = vmatprep.subr.bf16.mxu0 %v350_v24  ;;  %p392_p3 = por %p391_p2, %p390_p1 }
  0x13   :  { %377 = vmatpush3.bf16.msra.mxu1 %v374_v23 }
  0x14   :  { %379 = vmatprep.subr.bf16.mxu1 %v378_v37  ;;  %p393_p4 = pnand %p392_p3, %p386_p0 }
  0x15   :  { %353 = vmatpush3.bf16.msra.mxu0 %v350_v24 }
  0x16   :  { %355 = vmatprep.subr.bf16.mxu0 %v354_v27 }
  0x17   :  { %381 = vmatpush3.bf16.msra.mxu1 %v378_v37 }
  0x19   :  { %357 = vmatpush3.bf16.msra.mxu0 %v354_v27 }
  0x1a   :  { %359 = vmatprep.subr.bf16.mxu0 %v358_v30 }
  0x1d   :  { %361 = vmatpush3.bf16.msra.mxu0 %v358_v30 }
  0x1e   :  { %363 = vmatprep.subr.bf16.mxu0 %v362_v33 }
  0x21   :  { %365 = vmatpush3.bf16.msra.mxu0 %v362_v33 }
  0x24   :  { %313 = vmatmul.mubr.f32.vlgmr.msra.gmra.mrb[0].mxu0 %v35_v34 }
  0xf7   :  { %v314_v39 = vpop.f32.mrb[0].mxu0 }
  0xf8   :  { %v131_v40 = vadd.f32 %v314_v39, %v249_v38  ;;  %v125_v41 = vpop.f32.mrb[1].mxu0 }
  0xf9   :  { %v126_v42 = vadd.f32 %v249_v38, %v125_v41 }
  0xfa   :  { %v135_v44 = vmax.f32 %v131_v40, 0.0 }
  0xfb   :  { %v134_v43 = vmax.f32 %v126_v42, 0.0 }
  0xfd   :  { %331 = vmatprep.mubr.msk.f32.mxu1 %vm146_vm0, %v134_v43 }
  0xfe   :  { %332 = vmatmul.mubr.msk.f32.vlgmr.msra.gmra.mrb[0].mxu1 %vm146_vm0, %v135_v44 }
 0x1d1   :  { %v333_v46 = vpop.f32.mrb[0].mxu1 }
 0x1d2   :  { %v229_v47 = vadd.f32 %v333_v46, %v248_v45  ;;  %v219_v48 = vpop.f32.mrb[1].mxu1 }
 0x1d3   :  { %v228_v49 = vadd.f32 %v248_v45, %v219_v48 }
 0x1d4   :  { %231 = vst [vmem:[#allocation2 + $0x8] sm:$0xff] %v229_v47 }
 0x1d5   :  { %230 = vst [vmem:[#allocation2] sm:$0xff] %v228_v49 }
 0x1d6   :  { %396 = shalt.err (!%p393_p4)
}
 0x1d7   :  { %s397_s4 = scalar_lea.hbm %s543_s5, 256 }
 0x1d8   :  { %p398_p5 = scmp.ne.s32.totalorder %s543_s5, %s397_s4  ;;  %p401_p6 = scmp.lt.u32.totalorder %s397_s4, %s543_s5 }
 0x1da   :  { %p403_p7 = pnand %p401_p6, %p398_p5 }
 0x1dc   :  { %406 = shalt.err (!%p403_p7)
}
 0x1dd   :  { %s410_s29 = smov 128   ;;  %s411_s30 = smov 8  }
 0x1de   :  { %243 = dma.vmem_to_hbm [thread:$0]  %s238_s22, 256, %s543_s5, [#allocation3], %s410_s29, %s410_s29, %s411_s30  }
 0x1df   :  { %407 = dma.done.wait [#allocation3], 256  }
 0x1e0   :  { %408 = vsyncadd [#allocation3], 4294967040 }
 0x1e1   :  { %247 = vsyncpa [#allocation3], 1 }

</bundles_post_ra>
